<compile_context>
chip_gen: v7x
topology: tpu7x:2x2x1
jax: 0.10.0
libtpu: 0.0.40
codegen_flags: <defaults>
</compile_context>

<pallas_src>
import functools

import jax
import jax.numpy as jnp
from jax.experimental import pallas as pl
from jax.experimental.pallas import tpu as pltpu

IN_FEATURES = 4
HIDDEN = 128
N_ACTIONS = 2


def policy_kernel(x_ref, w1_ref, b1_ref, w2d_ref, b2d_ref, out_ref):
    # --- affine1 (4 -> 128) on the MXU; padding of the tiny K=4 contraction is free
    #     because the extended (vex) slot is otherwise idle in this kernel ---
    h = jnp.dot(x_ref[...], w1_ref[...],
                preferred_element_type=jnp.float32) + b1_ref[...]   # (TB, 128)

    # dropout(p=0.6): identity in eval mode.
    # TODO(synk): training-mode dropout (pltpu.prng_seed + Bernoulli mask + 1/(1-p)
    #             scaling) is not implemented; PyTorch rollouts may run with dropout on.
    h = jnp.maximum(h, 0.0)                                         # relu

    # --- 2-class head collapsed to one MXU dot + sigmoid:
    #       softmax([l0, l1])[0] = sigmoid(l0 - l1)
    #     with (l0 - l1) = h @ (w2[:,0] - w2[:,1]) + (b2[0] - b2[1]).
    #     No cross-lane XLU reductions, no exp-pair, no reciprocal. ---
    d = jnp.dot(h, w2d_ref[...],
                preferred_element_type=jnp.float32) + b2d_ref[...]  # (TB, 1)
    p0 = 1.0 / (1.0 + jnp.exp(-d))      # safe in f32: exp overflow -> inf -> p0 = 0

    # Single packed (TB, 2) store instead of two masked column stores.
    lane = jax.lax.broadcasted_iota(jnp.int32, out_ref.shape, 1)
    out_ref[...] = jnp.where(lane == 0, p0, 1.0 - p0)


def _largest_aligned_divisor(n, cap):
    """Largest multiple of 8 that divides n (n itself 8-aligned) and is <= cap."""
    best, d = 8, 8
    while d <= min(n, cap):
        if n % d == 0:
            best = d
        d += 8
    return best


def policy_forward(x, w1, b1, w2, b2, *, row_tile=512):
    """softmax(relu(x @ w1 + b1) @ w2 + b2, axis=1) via a batch-tiled Pallas kernel."""
    B, K = x.shape
    H = w1.shape[1]
    C = w2.shape[1]

    # Precomputed head parameters for the sigmoid identity.  Under the intended
    # usage (weights closed over + jit) these fold to constants.
    w2d = w2[:, 0:1] - w2[:, 1:2]       # (H, 1)
    b2d = b2[:, 0:1] - b2[:, 1:2]       # (1, 1)

    # Row tiling: avoid jnp.pad / out[:B] (each an extra HLO + HBM round trip)
    # whenever the 8-aligned batch admits a dividing tile.
    B8 = ((B + 7) // 8) * 8
    if B8 <= row_tile:
        tb = B8                          # single tile
    else:
        tb = _largest_aligned_divisor(B8, row_tile)
        if tb < 128:                     # pathological divisors: fall back to padding
            tb = row_tile
    padded_B = ((B8 + tb - 1) // tb) * tb

    x_in = x if padded_B == B else jnp.pad(x, ((0, padded_B - B), (0, 0)))
    grid = (padded_B // tb,)

    flops = 2 * padded_B * H * (K + 1)
    bytes_accessed = 4 * (padded_B * K + K * H + H + H + 1 + padded_B * C)

    out = pl.pallas_call(
        policy_kernel,
        out_shape=jax.ShapeDtypeStruct((padded_B, C), jnp.float32),
        grid_spec=pltpu.PrefetchScalarGridSpec(
            num_scalar_prefetch=0,
            grid=grid,
            in_specs=[
                pl.BlockSpec((tb, K), lambda i: (i, 0)),   # x: tiled over batch rows
                pl.BlockSpec((K, H), lambda i: (0, 0)),    # w1: VMEM-resident
                pl.BlockSpec((1, H), lambda i: (0, 0)),    # b1: VMEM-resident
                pl.BlockSpec((H, 1), lambda i: (0, 0)),    # w2_diff: VMEM-resident
                pl.BlockSpec((1, 1), lambda i: (0, 0)),    # b2_diff: VMEM-resident
            ],
            out_specs=pl.BlockSpec((tb, C), lambda i: (i, 0)),
        ),
        compiler_params=pltpu.CompilerParams(
            # Batch axis is independent -> megacore split on v7x (1 TC on v5e/v6e).
            dimension_semantics=("parallel",),
        ),
        cost_estimate=pl.CostEstimate(
            flops=flops,
            transcendentals=padded_B,
            bytes_accessed=bytes_accessed,
        ),
    )(x_in, w1, b1, w2d, b2d)

    return out if padded_B == B else out[:B]


def init_params(key):
    """Deterministic init mimicking PyTorch nn.Linear default (U[-1/sqrt(fan_in), +])."""
    k1, k2, k3, k4 = jax.random.split(key, 4)
    in1, h, out = IN_FEATURES, HIDDEN, N_ACTIONS
    bnd1 = 1.0 / jnp.sqrt(in1)
    bnd2 = 1.0 / jnp.sqrt(h)
    w1 = jax.random.uniform(k1, (in1, h), jnp.float32, -bnd1, bnd1)
    b1 = jax.random.uniform(k2, (1, h), jnp.float32, -bnd1, bnd1)
    w2 = jax.random.uniform(k3, (h, out), jnp.float32, -bnd2, bnd2)
    b2 = jax.random.uniform(k4, (1, out), jnp.float32, -bnd2, bnd2)
    return w1, b1, w2, b2


if __name__ == "__main__":
    key = jax.random.PRNGKey(0)
    kx, kp, kx2 = jax.random.split(key, 3)
    w1, b1, w2, b2 = init_params(kp)

    def ref_forward(x):
        return jax.nn.softmax(jnp.maximum(x @ w1 + b1, 0.0) @ w2 + b2, axis=1)

    forward = jax.jit(functools.partial(policy_forward, w1=w1, b1=b1, w2=w2, b2=b2))

    # Small batch of CartPole-like 4-dim observations (single 8-row tile, no pad/slice).
    B = 8
    x = jax.random.normal(kx, (B, IN_FEATURES), dtype=jnp.float32)
    probs = jax.block_until_ready(forward(x))
    assert probs.shape == (B, N_ACTIONS)
    assert jnp.allclose(probs, ref_forward(x), atol=1e-5), "mismatch vs reference (B=8)"
    assert jnp.allclose(jnp.sum(probs, axis=1), 1.0, atol=1e-5)

    # Larger batch: exercises the tiled, batch-parallel grid (600 -> 3 tiles of 200,
    # no pad / slice on the hot path).
    B2 = 600
    x2 = jax.random.normal(kx2, (B2, IN_FEATURES), dtype=jnp.float32)
    probs2 = jax.block_until_ready(forward(x2))
    assert probs2.shape == (B2, N_ACTIONS)
    assert jnp.allclose(probs2, ref_forward(x2), atol=1e-5), "mismatch vs reference (B=600)"
    assert jnp.allclose(jnp.sum(probs2, axis=1), 1.0, atol=1e-5)

    print("KERNEL_OK")
</pallas_src>

<mosaic_0001>
module attributes {stable_mosaic.version = 11 : i64} {
  func.func @policy_kernel(%arg0: i32, %arg1: memref<8x4xf32, #tpu.memory_space<vmem>>, %arg2: memref<4x128xf32, #tpu.memory_space<vmem>>, %arg3: memref<1x128xf32, #tpu.memory_space<vmem>>, %arg4: memref<128x1xf32, #tpu.memory_space<vmem>>, %arg5: memref<1x1xf32, #tpu.memory_space<vmem>>, %arg6: memref<8x2xf32, #tpu.memory_space<vmem>>) attributes {dimension_semantics = [#tpu.dimension_semantics<parallel>], iteration_bounds = array<i64: 1>, scalar_prefetch = 0 : i64, scratch_operands = 0 : i64, tpu.core_type = #tpu.core_type<tc>, window_params = [{transform_indices = @transform_0, window_bounds = array<i64: 8, 4>}, {pipeline_mode = #tpu.pipeline_mode<synchronous>, transform_indices = @transform_1, window_bounds = array<i64: 4, 128>}, {pipeline_mode = #tpu.pipeline_mode<synchronous>, transform_indices = @transform_2, window_bounds = array<i64: 1, 128>}, {pipeline_mode = #tpu.pipeline_mode<synchronous>, transform_indices = @transform_3, window_bounds = array<i64: 128, 1>}, {pipeline_mode = #tpu.pipeline_mode<synchronous>, transform_indices = @transform_4, window_bounds = array<i64: 1, 1>}, {transform_indices = @transform_5, window_bounds = array<i64: 8, 2>}]} {
    %c0 = arith.constant 0 : index
    %c0_0 = arith.constant 0 : index
    %0 = vector.load %arg1[%c0, %c0_0] : memref<8x4xf32, #tpu.memory_space<vmem>>, vector<8x4xf32>
    %c0_1 = arith.constant 0 : index
    %c0_2 = arith.constant 0 : index
    %1 = vector.load %arg2[%c0_1, %c0_2] : memref<4x128xf32, #tpu.memory_space<vmem>>, vector<4x128xf32>
    %cst = arith.constant dense<0.000000e+00> : vector<8x128xf32>
    %2 = tpu.matmul %0, %1, %cst {dimension_numbers = #tpu.dot_dimension_numbers<[1], [0], [0], [1], [0, 0, 1, 1], [], []>} : vector<8x4xf32>, vector<4x128xf32>, vector<8x128xf32> -> vector<8x128xf32>
    %c0_3 = arith.constant 0 : index
    %c0_4 = arith.constant 0 : index
    %3 = vector.load %arg3[%c0_3, %c0_4] : memref<1x128xf32, #tpu.memory_space<vmem>>, vector<1x128xf32>
    %4 = vector.broadcast %3 : vector<1x128xf32> to vector<8x128xf32>
    %5 = arith.addf %2, %4 : vector<8x128xf32>
    %cst_5 = arith.constant 0.000000e+00 : f32
    %6 = vector.broadcast %cst_5 : f32 to vector<8x128xf32>
    %7 = arith.maximumf %5, %6 : vector<8x128xf32>
    %c0_6 = arith.constant 0 : index
    %c0_7 = arith.constant 0 : index
    %8 = vector.load %arg4[%c0_6, %c0_7] : memref<128x1xf32, #tpu.memory_space<vmem>>, vector<128x1xf32>
    %cst_8 = arith.constant dense<0.000000e+00> : vector<8x1xf32>
    %9 = tpu.matmul %7, %8, %cst_8 {dimension_numbers = #tpu.dot_dimension_numbers<[1], [0], [0], [1], [0, 0, 1, 1], [], []>} : vector<8x128xf32>, vector<128x1xf32>, vector<8x1xf32> -> vector<8x1xf32>
    %c0_9 = arith.constant 0 : index
    %c0_10 = arith.constant 0 : index
    %10 = vector.load %arg5[%c0_9, %c0_10] : memref<1x1xf32, #tpu.memory_space<vmem>>, vector<1x1xf32>
    %11 = vector.broadcast %10 : vector<1x1xf32> to vector<8x1xf32>
    %12 = arith.addf %9, %11 : vector<8x1xf32>
    %cst_11 = arith.constant 0.000000e+00 : f32
    %13 = vector.broadcast %cst_11 : f32 to vector<8x1xf32>
    %14 = arith.subf %13, %12 : vector<8x1xf32>
    %15 = math.exp %14 : vector<8x1xf32>
    %cst_12 = arith.constant 1.000000e+00 : f32
    %16 = vector.broadcast %cst_12 : f32 to vector<8x1xf32>
    %17 = arith.addf %16, %15 : vector<8x1xf32>
    %cst_13 = arith.constant 1.000000e+00 : f32
    %18 = vector.broadcast %cst_13 : f32 to vector<8x1xf32>
    %19 = arith.divf %18, %17 : vector<8x1xf32>
    %20 = tpu.iota {dimensions = array<i32: 1>} : vector<8x2xi32>
    %c0_i32 = arith.constant 0 : i32
    %21 = vector.broadcast %c0_i32 : i32 to vector<8x2xi32>
    %22 = arith.cmpi eq, %20, %21 : vector<8x2xi32>
    %cst_14 = arith.constant 1.000000e+00 : f32
    %23 = vector.broadcast %cst_14 : f32 to vector<8x1xf32>
    %24 = arith.subf %23, %19 : vector<8x1xf32>
    %25 = vector.shape_cast %19 : vector<8x1xf32> to vector<8x1xf32>
    %26 = vector.broadcast %25 : vector<8x1xf32> to vector<8x2xf32>
    %27 = vector.shape_cast %24 : vector<8x1xf32> to vector<8x1xf32>
    %28 = vector.broadcast %27 : vector<8x1xf32> to vector<8x2xf32>
    %29 = arith.select %22, %26, %28 : vector<8x2xi1>, vector<8x2xf32>
    %c0_15 = arith.constant 0 : index
    %c0_16 = arith.constant 0 : index
    %30 = vector.load %arg6[%c0_15, %c0_16] : memref<8x2xf32, #tpu.memory_space<vmem>>, vector<8x2xf32>
    tpu.vector_store %arg6[%c0_15, %c0_16], %29 {strides = array<i32>} : memref<8x2xf32, #tpu.memory_space<vmem>>, vector<8x2xf32>,
    return
  }
  func.func @transform_0(%arg0: i32) -> (i32, i32) {
    %c0_i32 = arith.constant 0 : i32
    %c0_i32_0 = arith.constant 0 : i32
    return %arg0, %c0_i32 : i32, i32
  }
  func.func @transform_1(%arg0: i32) -> (i32, i32) {
    %c0_i32 = arith.constant 0 : i32
    %c0_i32_0 = arith.constant 0 : i32
    %c0_i32_1 = arith.constant 0 : i32
    return %c0_i32, %c0_i32_0 : i32, i32
  }
  func.func @transform_2(%arg0: i32) -> (i32, i32) {
    %c0_i32 = arith.constant 0 : i32
    %c0_i32_0 = arith.constant 0 : i32
    %c0_i32_1 = arith.constant 0 : i32
    return %c0_i32, %c0_i32_0 : i32, i32
  }
  func.func @transform_3(%arg0: i32) -> (i32, i32) {
    %c0_i32 = arith.constant 0 : i32
    %c0_i32_0 = arith.constant 0 : i32
    %c0_i32_1 = arith.constant 0 : i32
    return %c0_i32, %c0_i32_0 : i32, i32
  }
  func.func @transform_4(%arg0: i32) -> (i32, i32) {
    %c0_i32 = arith.constant 0 : i32
    %c0_i32_0 = arith.constant 0 : i32
    %c0_i32_1 = arith.constant 0 : i32
    return %c0_i32, %c0_i32_0 : i32, i32
  }
  func.func @transform_5(%arg0: i32) -> (i32, i32) {
    %c0_i32 = arith.constant 0 : i32
    %c0_i32_0 = arith.constant 0 : i32
    return %arg0, %c0_i32 : i32, i32
  }
}

</mosaic_0001>

<bundles_post_ra>
// kernel: policy_forward.1
= control target key start
LH: loop header
LB: loop body
LE: loop exit
PB: predicated region body
PF: predicated region fallthrough
CT: control target
= control target key end

     0   :  { %s432_s0 = inlined_call_operand.vmem [shape: f32[8,4], index: 0, kind: input, shape index: {}]   ;;  %s433_s1 = inlined_call_operand.vmem [shape: f32[4,128], index: 1, kind: input, shape index: {}]   ;;  %s434_s2 = inlined_call_operand.vmem [shape: f32[1,128], index: 2, kind: input, shape index: {}]   ;;  %s435_s3 = inlined_call_operand.hbm [shape: f32[128,1], index: 3, kind: input, shape index: {}]   ;;  %s436_s4 = inlined_call_operand.<no memory space> [shape: f32[1,1], index: 4, kind: input, shape index: {}]   ;;  %s437_s5 = inlined_call_operand.vmem [shape: f32[8,2], index: 5, kind: output, shape index: {}]  }
   0x1   :  { %v10_v0 = vstv %s436_s4 }
   0x2   :  { %11 = vst [vmem:[#allocation2] sm:$0x1] %v10_v0 }
   0x3   :  { %12 = vsyncpa [#allocation4], 0  ;;  %s368_s20 = smov [#allocation3]   ;;  %s344_s24 = scalar_lea.hbm %s435_s3, 2048 }
   0x4   :  { %s24_s21 = sshll.u32 %s368_s20, 4  ;;  %p345_p0 = scmp.ne.s32.totalorder %s435_s3, %s344_s24  ;;  %s25_s21 = int_to_ptr.vmem [resolvable:$true] %s24_s21 }
   0x5   :  { %p348_p1 = scmp.lt.u32.totalorder %s344_s24, %s435_s3 }
   0x7   :  { %p350_p2 = pnand %p348_p1, %p345_p0 }
   0x9   :  { %353 = shalt.err (!%p350_p2)
}
   0xa   :  { %s354_s4 = scalar_lea.vmem %s25_s21, 2048  ;;  %p359_p4 = scmp.lt.s32.totalorder %s25_s21, %s25_s21 }
   0xb   :  { %p355_p3 = scmp.ne.s32.totalorder %s25_s21, %s354_s4  ;;  %p360_p5 = scmp.lt.s32.totalorder %s354_s4, %s354_s4 }
   0xd   :  { %p361_p6 = por %p360_p5, %p359_p4 }
   0xf   :  { %p362_p7 = pnand %p361_p6, %p355_p3 }
  0x11   :  { %365 = shalt.err (!%p362_p7)
}
  0x12   :  { %s369_s29 = smov 128   ;;  %s370_s30 = smov 8  }
  0x13   :  { %30 = dma.hbm_to_vmem [thread:$0]  %s435_s3, 2048, %s25_s21, [#allocation4], %s369_s29, %s369_s29, %s370_s30  }
  0x14   :  { %366 = dma.done.wait [#allocation4], 2048  }
  0x15   :  { %367 = vsyncadd [#allocation4], 4294965248  ;;  %v371_v1 = vmov 0.0   ;;  %vm372_vm0 = vmmov 0   ;;  %v373_v2 = vmov 0.0|0.0   ;;  %vm49_vm1 = vcmask 1043456  }
  0x16   :  { %268 = vmatprep.subr.mxu0 %v371_v1  ;;  %270 = vmatprep.mubr.msk.f32.mxu0 %vm372_vm0, %v371_v1  ;;  %vm45_vm2 = vcmask 31744   ;;  %v37_v3 = vld [vmem:[%s433_s1] sm:$0xf]  ;;  %v125_v6 = vld [vmem:[#allocation3 + $0x8] sm:$0xff]  ;;  %v126_v7 = vld [vmem:[#allocation3 + $0x10] sm:$0xff]  ;;  %v374_v34 = vmov 0   ;;  %v223_v45 = vlaneseq }
  0x17   :  { %308 = vmatprep.subr.bf16.mxu1 %v373_v2  ;;  %305 = vmatprep.mubr.msk.f32.mxu1 %vm372_vm0, %v371_v1  ;;  %v36_v4 = vld [vmem:[%s432_s0] sm:$0xff]  ;;  %v129_v12 = vld [vmem:[#allocation3 + $0x28] sm:$0xff]  ;;  %v130_v14 = vld [vmem:[#allocation3 + $0x30] sm:$0xff]  ;;  %vm238_vm4 = vcmask 15360  }
  0x18   :  { %v124_v5 = vld [vmem:[#allocation3] sm:$0xff]  ;;  %269 = vmatpush3.msk.msra.mxu0 %vm49_vm1, %v37_v3  ;;  %v127_v8 = vld [vmem:[#allocation3 + $0x18] sm:$0xff]  ;;  %v133_v18 = vld [vmem:[#allocation3 + $0x48] sm:$0xff]  ;;  %339 = vset.pattern.permute.xlu0 %v374_v34  ;;  %v224_v46 = vand.u32 127, %v223_v45 }
  0x19   :  { %271 = vmatmul.mubr.msk.f32.vlgmr.msra.gmra.mrb[0].mxu0 %vm45_vm2, %v36_v4  ;;  %v309_v9 = vpack.c.bf16 %v125_v6, %v124_v5  ;;  %v312_v10 = vpack.c.bf16 %v127_v8, %v126_v7  ;;  %v128_v11 = vld [vmem:[#allocation3 + $0x20] sm:$0xff]  ;;  %v131_v15 = vld [vmem:[#allocation3 + $0x38] sm:$0xff]  ;;  %v134_v20 = vld [vmem:[#allocation3 + $0x50] sm:$0xff] }
  0x1a   :  { %v315_v13 = vpack.c.bf16 %v129_v12, %v128_v11  ;;  %v318_v16 = vpack.c.bf16 %v131_v15, %v130_v14  ;;  %v132_v17 = vld [vmem:[#allocation3 + $0x40] sm:$0xff]  ;;  %v135_v21 = vld [vmem:[#allocation3 + $0x58] sm:$0xff]  ;;  %v137_v24 = vld [vmem:[#allocation3 + $0x68] sm:$0xff]  ;;  %vm225_vm3 = vcmp.eq.s32.totalorder %v224_v46, 0 }
  0x1b   :  { %310 = vmatpush3.bf16.msra.mxu1 %v309_v9  ;;  %v321_v19 = vpack.c.bf16 %v133_v18, %v132_v17  ;;  %v324_v22 = vpack.c.bf16 %v135_v21, %v134_v20  ;;  %v136_v23 = vld [vmem:[#allocation3 + $0x60] sm:$0xff]  ;;  %v138_v26 = vld [vmem:[#allocation3 + $0x70] sm:$0xff]  ;;  %v139_v27 = vld [vmem:[#allocation3 + $0x78] sm:$0xff] }
  0x1c   :  { %311 = vmatprep.subr.bf16.mxu1 %v373_v2  ;;  %v327_v25 = vpack.c.bf16 %v137_v24, %v136_v23  ;;  %v330_v28 = vpack.c.bf16 %v139_v27, %v138_v26  ;;  %v245_v29 = vld [vmem:[%s434_s2] ss:$0 sm:$0xff] }
  0x1d   :  { %v248_v35 = vld [vmem:[#allocation2] ss:$0 sm:$0xff] }
  0x1f   :  { %313 = vmatpush3.bf16.msra.mxu1 %v312_v10 }
  0x20   :  { %314 = vmatprep.subr.bf16.mxu1 %v373_v2 }
  0x23   :  { %316 = vmatpush3.bf16.msra.mxu1 %v315_v13 }
  0x24   :  { %317 = vmatprep.subr.bf16.mxu1 %v373_v2 }
  0x27   :  { %319 = vmatpush3.bf16.msra.mxu1 %v318_v16 }
  0x28   :  { %320 = vmatprep.subr.bf16.mxu1 %v373_v2 }
  0x2b   :  { %322 = vmatpush3.bf16.msra.mxu1 %v321_v19 }
  0x2c   :  { %323 = vmatprep.subr.bf16.mxu1 %v373_v2 }
  0x2f   :  { %325 = vmatpush3.bf16.msra.mxu1 %v324_v22 }
  0x30   :  { %326 = vmatprep.subr.bf16.mxu1 %v373_v2 }
  0x33   :  { %328 = vmatpush3.bf16.msra.mxu1 %v327_v25 }
  0x34   :  { %329 = vmatprep.subr.bf16.mxu1 %v373_v2 }
  0x37   :  { %331 = vmatpush3.bf16.msra.mxu1 %v330_v28 }
  0xec   :  { %v119_v30 = vpop.f32.mrb[0].mxu0 }
  0xed   :  { %v120_v31 = vadd.f32 %v245_v29, %v119_v30  ;;  %v272_v32 = vpop.f32.mrb[1].mxu0 }
  0xef   :  { %v123_v33 = vmax.f32 %v120_v31, 0.0 }
  0xf1   :  { %306 = vmatmul.mubr.f32.vlgmr.msra.gmra.mrb[0].mxu1 %v123_v33 }
 0x1c4   :  { %v213_v36 = vpop.f32.mrb[0].mxu1 }
 0x1c5   :  { %v214_v37 = vadd.f32 %v248_v35, %v213_v36  ;;  %v307_v38 = vpop.f32.mrb[1].mxu1 }
 0x1c7   :  { %v217_v39 = vsub.f32 0.0, %v214_v37 }
 0x1c9   :  { %v218_v40 = vmul.f32 1.442695, %v217_v39 }
 0x1cb   :  { %340 = vpow2.f32 %v218_v40 }
 0x1d5   :  { %v341_v41 = vpop.eup %340 }
 0x1d6   :  { %v220_v42 = vadd.f32 1.0, %v341_v41 }
 0x1d8   :  { %342 = vrcp.f32 %v220_v42 }
 0x1e2   :  { %v343_v43 = vpop.eup %342 }
 0x1e3   :  { %229 = vperm.xlu0 %339, %v343_v43   ;;  %v226_v44 = vsub.f32 1.0, %v343_v43 }
 0x1e7   :  { %234 = vperm.xlu0 %339, %v226_v44  }
 0x262   :  { %v230_v47 = vpop.permute.xlu0 %229 }
 0x266   :  { %v235_v48 = vpop.permute.xlu0 %234 }
 0x267   :  { %v237_v49 = vsel %vm225_vm3, %v230_v47, %v235_v48 }
 0x268   :  { %239 = vst.msk [vmem:[%s437_s5] sm:$0xff] %vm238_vm4, %v237_v49 }
 0x269   :  { %244 = vsyncpa [#allocation4], 1 }

</bundles_post_ra>
